<compile_context>
chip_gen: v7x
topology: tpu7x:2x2x1
jax: 0.10.0
libtpu: 0.0.40
codegen_flags: <defaults>
</compile_context>

<pallas_src>
import functools

import jax
import jax.numpy as jnp
from jax import lax
from jax.experimental import pallas as pl
from jax.experimental.pallas import tpu as pltpu


def _round_up(x, m):
    return ((x + m - 1) // m) * m


# -----------------------------------------------------------------------------
# VMEM-budget helpers (generation-aware: v5e/v6e = 128 MiB phys, v7x = 64 MiB).
# -----------------------------------------------------------------------------
def _vmem_capacity_bytes():
    try:
        return int(pltpu.get_tpu_info().vmem_capacity_bytes)
    except Exception:
        return 64 << 20          # assume smallest (v7x per-TC) if query fails


def _disparity_budget():
    cap = _vmem_capacity_bytes()
    # In-kernel footprint ~= (2 inputs + 1 output) * 2 buffers + ~8 live
    # full-block f32 temporaries ~= 14 * tile_bytes. Stay well clear of the
    # physical ceiling on every generation (v7x: ~1.3 MiB tiles; v6e: ~2.7 MiB).
    tile_bytes = int(min(4 << 20, cap // 48))
    vmem_limit = int(min(cap // 2, 64 << 20))
    return max(tile_bytes, 256 << 10), vmem_limit


def _choose_tile_h(H, W, max_bytes):
    """Largest tile_h dividing H, multiple of 8, with tile_h * W * 4 <= max_bytes."""
    if H % 8 != 0:
        return H                 # block equals full dim -> still legal
    cap_rows = max(8, max_bytes // (W * 4))
    best = 8
    for t in range(8, H + 1, 8):
        if H % t == 0 and t <= cap_rows:
            best = t
    return best


def _choose_tile_px(hw_pad, cap):
    """Largest multiple of 128 that divides hw_pad (a 128-multiple) and is <= cap."""
    n = hw_pad // 128
    best = 1
    for k in range(1, n + 1):
        if n % k == 0 and k * 128 <= cap:
            best = k
    return best * 128


# -----------------------------------------------------------------------------
# Kernel 1: ConcentrationNet hot path — per-pixel 2-layer MLP (1x1 convs) over
# the flattened event channels, computed transposed so pixels sit on the lane
# axis:  h = relu(W1^T @ x + b1);  o = W2^T @ h + b2   (x: (cin, tile_px), bf16)
# Left and right views (shared weights) are handled in one grid step.
# -----------------------------------------------------------------------------
def _concentration_kernel(xl_ref, xr_ref, w1t_ref, b1_ref, w2t_ref, b2_ref,
                          ol_ref, or_ref):
    w1t = w1t_ref[...]          # (hidden, cin)  bf16
    b1 = b1_ref[...]            # (hidden, 1)    f32
    w2t = w2t_ref[...]          # (1, hidden)    bf16
    b2 = b2_ref[...]            # (1, 1)         f32

    def mlp(x_ref, o_ref):
        x = x_ref[0]                                              # (cin, tile_px) bf16
        h = jnp.dot(w1t, x, preferred_element_type=jnp.float32)   # (hidden, tile_px) f32
        h = jnp.maximum(h + b1, 0.0).astype(jnp.bfloat16)
        o = jnp.dot(w2t, h, preferred_element_type=jnp.float32)   # (1, tile_px) f32
        o_ref[0] = o + b2                                         # lane-dense store

    mlp(xl_ref, ol_ref)
    mlp(xr_ref, or_ref)


def concentration_net(left_event, right_event, params, *, tile_px_cap=32768):
    """left/right_event: (B, C, S, T, H, W) -> (left_sharp, right_sharp) (B, H, W) f32."""
    B, C, S, T, H, W = left_event.shape
    cin = C * S * T
    HW = H * W

    # Minimal padding: only up to a multiple of 128 on the pixel (lane) axis.
    HW_pad = _round_up(HW, 128)
    tile_px = _choose_tile_px(HW_pad, tile_px_cap)

    def prep(ev):
        # bf16 in HBM (no-op if already bf16) + free contiguous reshape.
        x = ev.astype(jnp.bfloat16).reshape(B, cin, HW)
        if HW_pad != HW:
            x = jnp.pad(x, ((0, 0), (0, 0), (0, HW_pad - HW)))
        return x

    xl = prep(left_event)
    xr = prep(right_event)

    w1t = params["w1"].T.astype(jnp.bfloat16)               # (hidden, cin)
    b1 = params["b1"].reshape(-1, 1).astype(jnp.float32)    # (hidden, 1)
    w2t = params["w2"].T.astype(jnp.bfloat16)               # (1, hidden)
    b2 = params["b2"].reshape(1, 1).astype(jnp.float32)     # (1, 1)
    hidden = w1t.shape[0]

    x_spec = pl.BlockSpec((1, cin, tile_px), lambda b, p: (b, 0, p))
    o_spec = pl.BlockSpec((1, 1, tile_px), lambda b, p: (b, 0, p))

    def w_spec(shape):
        return pl.BlockSpec(shape, lambda b, p: (0, 0))

    out_l, out_r = pl.pallas_call(
        _concentration_kernel,
        out_shape=(jax.ShapeDtypeStruct((B, 1, HW_pad), jnp.float32),
                   jax.ShapeDtypeStruct((B, 1, HW_pad), jnp.float32)),
        grid_spec=pltpu.PrefetchScalarGridSpec(
            num_scalar_prefetch=0,
            grid=(B, HW_pad // tile_px),
            in_specs=[x_spec, x_spec,
                      w_spec((hidden, cin)), w_spec((hidden, 1)),
                      w_spec((1, hidden)), w_spec((1, 1))],
            out_specs=[o_spec, o_spec],
        ),
        compiler_params=pltpu.CompilerParams(
            dimension_semantics=("parallel", "parallel")),
    )(xl, xr, w1t, b1, w2t, b2)

    def post(out):
        return out[:, 0, :HW].reshape(B, H, W)

    return post(out_l), post(out_r)


# -----------------------------------------------------------------------------
# Kernel 2: StereoMatchingNetwork hot path — cost volume over D disparities and
# ONE-PASS online soft-argmin, per (batch, H-tile) block so VMEM stays bounded.
#   cost[h,w,d] = -|L[h,w] - R[h,w-d]|   (w < d masked out)
#   disp[h,w]   = sum_d d * softmax_d(cost)
# -----------------------------------------------------------------------------
def _disparity_kernel(l_ref, r_ref, o_ref, *, max_disp):
    L = l_ref[...]                                          # (1, tile_h, W) f32
    R = r_ref[...]
    col = lax.broadcasted_iota(jnp.int32, L.shape, 2)
    NEG = jnp.float32(-1e9)

    def cost_at(d):
        Rs = pltpu.roll(R, shift=d, axis=2)                 # R[..., w-d] at lane w
        return jnp.where(col >= d, -jnp.abs(L - Rs), NEG)

    # Online (flash-style) soft-argmin: one cost evaluation + one rescale per d.
    m = cost_at(0)                                          # d = 0 is never masked
    denom = jnp.ones(L.shape, jnp.float32)
    numer = jnp.zeros(L.shape, jnp.float32)

    def step(d, m, denom, numer, d_f32):
        c = cost_at(d)
        m_new = jnp.maximum(m, c)
        a = jnp.exp(m - m_new)                              # EUP
        e = jnp.exp(c - m_new)                              # EUP
        return m_new, a * denom + e, a * numer + e * d_f32

    if max_disp <= 16:
        # Short disparity range: fully unrolled (LLO scheduler visibility).
        for d in range(1, max_disp):
            m, denom, numer = step(d, m, denom, numer, jnp.float32(d))
    else:
        # Long disparity range: fori_loop bounds vreg live ranges / compile time.
        def body(d, carry):
            mm, dd, nn = carry
            return step(d, mm, dd, nn, d.astype(jnp.float32))
        m, denom, numer = lax.fori_loop(1, max_disp, body, (m, denom, numer),
                                        unroll=2)

    o_ref[...] = numer * pl.reciprocal(denom, approx=True)


def stereo_matching_net(left_sharp, right_sharp, *, max_disp=8):
    """left/right_sharp: (B, H, W) f32 -> disparity (B, H, W) f32."""
    B, H, W = left_sharp.shape
    tile_bytes, vmem_limit = _disparity_budget()
    tile_h = _choose_tile_h(H, W, tile_bytes)
    kernel = functools.partial(_disparity_kernel, max_disp=max_disp)
    disp = pl.pallas_call(
        kernel,
        out_shape=jax.ShapeDtypeStruct((B, H, W), jnp.float32),
        grid_spec=pltpu.PrefetchScalarGridSpec(
            num_scalar_prefetch=0,
            grid=(B, H // tile_h),
            in_specs=[
                pl.BlockSpec((1, tile_h, W), lambda b, h: (b, h, 0)),
                pl.BlockSpec((1, tile_h, W), lambda b, h: (b, h, 0)),
            ],
            out_specs=pl.BlockSpec((1, tile_h, W), lambda b, h: (b, h, 0)),
        ),
        compiler_params=pltpu.CompilerParams(
            dimension_semantics=("parallel", "parallel"),
            vmem_limit_bytes=vmem_limit),
    )(left_sharp, right_sharp)
    return disp


# -----------------------------------------------------------------------------
# Full forward (mirrors EventStereoObjectDetectionNetwork.forward with
# is_freeze_disp / empty gt_labels path: no disp loss, detection head omitted).
# -----------------------------------------------------------------------------
def init_params(key, cin, hidden=32):
    k1, k2, k3, k4 = jax.random.split(key, 4)
    return {
        "w1": jax.random.normal(k1, (cin, hidden), jnp.float32) * 0.1,
        "b1": jax.random.normal(k2, (1, hidden), jnp.float32) * 0.01,
        "w2": jax.random.normal(k3, (hidden, 1), jnp.float32) * 0.1,
        "b2": jax.random.normal(k4, (1, 1), jnp.float32) * 0.01,
    }


def event_stereo_forward(left_event, right_event, params, *, max_disp=8):
    # Shared-weight concentration net applied to both views (single pallas_call).
    left_sharp, right_sharp = concentration_net(left_event, right_event, params)
    # Disparity pyramid (single scale here); [-1] is the full-resolution map.
    pred_disparity_pyramid = [stereo_matching_net(left_sharp, right_sharp,
                                                  max_disp=max_disp)]
    loss_final = None
    preds_final = {
        "disparity": pred_disparity_pyramid[-1],
        "concentrate": {"left": left_sharp, "right": right_sharp},
    }
    return preds_final, loss_final


if __name__ == "__main__":
    key = jax.random.PRNGKey(0)
    k_in_l, k_in_r, k_p = jax.random.split(key, 3)

    # (b, c, s, t, h, w) event tensors — small synthetic shapes.
    B, C, S, T, H, W = 2, 2, 2, 2, 16, 16
    left_event = jax.random.normal(k_in_l, (B, C, S, T, H, W), jnp.float32)
    right_event = jax.random.normal(k_in_r, (B, C, S, T, H, W), jnp.float32)

    params = init_params(k_p, cin=C * S * T, hidden=32)

    forward = jax.jit(functools.partial(event_stereo_forward, max_disp=8))
    preds_final, loss_final = forward(left_event, right_event, params)

    jax.block_until_ready(preds_final["disparity"])
    jax.block_until_ready(preds_final["concentrate"]["left"])

    assert preds_final["disparity"].shape == (B, H, W)
    assert preds_final["concentrate"]["left"].shape == (B, H, W)
    assert preds_final["concentrate"]["right"].shape == (B, H, W)
    assert loss_final is None
    print("KERNEL_OK")
</pallas_src>

<mosaic_0001>
module attributes {stable_mosaic.version = 11 : i64} {
  func.func @_concentration_kernel(%arg0: i32, %arg1: i32, %arg2: memref<1x8x256xbf16, #tpu.memory_space<vmem>>, %arg3: memref<1x8x256xbf16, #tpu.memory_space<vmem>>, %arg4: memref<32x8xbf16, #tpu.memory_space<vmem>>, %arg5: memref<32x1xf32, #tpu.memory_space<vmem>>, %arg6: memref<1x32xbf16, #tpu.memory_space<vmem>>, %arg7: memref<1x1xf32, #tpu.memory_space<vmem>>, %arg8: memref<1x1x256xf32, #tpu.memory_space<vmem>>, %arg9: memref<1x1x256xf32, #tpu.memory_space<vmem>>) attributes {dimension_semantics = [#tpu.dimension_semantics<parallel>, #tpu.dimension_semantics<parallel>], iteration_bounds = array<i64: 2, 1>, scalar_prefetch = 0 : i64, scratch_operands = 0 : i64, tpu.core_type = #tpu.core_type<tc>, window_params = [{transform_indices = @transform_0, window_bounds = array<i64: 1, 8, 256>}, {transform_indices = @transform_1, window_bounds = array<i64: 1, 8, 256>}, {pipeline_mode = #tpu.pipeline_mode<synchronous>, transform_indices = @transform_2, window_bounds = array<i64: 32, 8>}, {pipeline_mode = #tpu.pipeline_mode<synchronous>, transform_indices = @transform_3, window_bounds = array<i64: 32, 1>}, {pipeline_mode = #tpu.pipeline_mode<synchronous>, transform_indices = @transform_4, window_bounds = array<i64: 1, 32>}, {pipeline_mode = #tpu.pipeline_mode<synchronous>, transform_indices = @transform_5, window_bounds = array<i64: 1, 1>}, {transform_indices = @transform_6, window_bounds = array<i64: 1, 1, 256>}, {transform_indices = @transform_7, window_bounds = array<i64: 1, 1, 256>}]} {
    %c0 = arith.constant 0 : index
    %c0_0 = arith.constant 0 : index
    %0 = vector.load %arg4[%c0, %c0_0] : memref<32x8xbf16, #tpu.memory_space<vmem>>, vector<32x8xbf16>
    %c0_1 = arith.constant 0 : index
    %c0_2 = arith.constant 0 : index
    %1 = vector.load %arg5[%c0_1, %c0_2] : memref<32x1xf32, #tpu.memory_space<vmem>>, vector<32x1xf32>
    %c0_3 = arith.constant 0 : index
    %c0_4 = arith.constant 0 : index
    %2 = vector.load %arg6[%c0_3, %c0_4] : memref<1x32xbf16, #tpu.memory_space<vmem>>, vector<1x32xbf16>
    %c0_5 = arith.constant 0 : index
    %c0_6 = arith.constant 0 : index
    %3 = vector.load %arg7[%c0_5, %c0_6] : memref<1x1xf32, #tpu.memory_space<vmem>>, vector<1x1xf32>
    %c0_7 = arith.constant 0 : index
    %c0_8 = arith.constant 0 : index
    %c0_9 = arith.constant 0 : index
    %4 = vector.load %arg2[%c0_7, %c0_8, %c0_9] : memref<1x8x256xbf16, #tpu.memory_space<vmem>>, vector<1x8x256xbf16>
    %5 = vector.shape_cast %4 : vector<1x8x256xbf16> to vector<8x256xbf16>
    %cst = arith.constant dense<0.000000e+00> : vector<32x256xf32>
    %6 = tpu.matmul %0, %5, %cst {dimension_numbers = #tpu.dot_dimension_numbers<[1], [0], [0], [1], [0, 0, 1, 1], [], []>} : vector<32x8xbf16>, vector<8x256xbf16>, vector<32x256xf32> -> vector<32x256xf32>
    %7 = vector.broadcast %1 : vector<32x1xf32> to vector<32x256xf32>
    %8 = arith.addf %6, %7 : vector<32x256xf32>
    %cst_10 = arith.constant 0.000000e+00 : f32
    %9 = vector.broadcast %cst_10 : f32 to vector<32x256xf32>
    %10 = arith.maximumf %8, %9 : vector<32x256xf32>
    %11 = arith.truncf %10 : vector<32x256xf32> to vector<32x256xbf16>
    %cst_11 = arith.constant dense<0.000000e+00> : vector<1x256xf32>
    %12 = tpu.matmul %2, %11, %cst_11 {dimension_numbers = #tpu.dot_dimension_numbers<[1], [0], [0], [1], [0, 0, 1, 1], [], []>} : vector<1x32xbf16>, vector<32x256xbf16>, vector<1x256xf32> -> vector<1x256xf32>
    %13 = vector.broadcast %3 : vector<1x1xf32> to vector<1x256xf32>
    %14 = arith.addf %12, %13 : vector<1x256xf32>
    %c0_12 = arith.constant 0 : index
    %c0_13 = arith.constant 0 : index
    %c0_14 = arith.constant 0 : index
    %15 = vector.load %arg8[%c0_12, %c0_13, %c0_14] : memref<1x1x256xf32, #tpu.memory_space<vmem>>, vector<1x1x256xf32>
    %16 = vector.shape_cast %15 : vector<1x1x256xf32> to vector<1x256xf32>
    %17 = vector.shape_cast %14 : vector<1x256xf32> to vector<1x1x256xf32>
    tpu.vector_store %arg8[%c0_12, %c0_13, %c0_14], %17 {strides = array<i32>} : memref<1x1x256xf32, #tpu.memory_space<vmem>>, vector<1x1x256xf32>,
    %c0_15 = arith.constant 0 : index
    %c0_16 = arith.constant 0 : index
    %c0_17 = arith.constant 0 : index
    %18 = vector.load %arg3[%c0_15, %c0_16, %c0_17] : memref<1x8x256xbf16, #tpu.memory_space<vmem>>, vector<1x8x256xbf16>
    %19 = vector.shape_cast %18 : vector<1x8x256xbf16> to vector<8x256xbf16>
    %cst_18 = arith.constant dense<0.000000e+00> : vector<32x256xf32>
    %20 = tpu.matmul %0, %19, %cst_18 {dimension_numbers = #tpu.dot_dimension_numbers<[1], [0], [0], [1], [0, 0, 1, 1], [], []>} : vector<32x8xbf16>, vector<8x256xbf16>, vector<32x256xf32> -> vector<32x256xf32>
    %21 = vector.broadcast %1 : vector<32x1xf32> to vector<32x256xf32>
    %22 = arith.addf %20, %21 : vector<32x256xf32>
    %cst_19 = arith.constant 0.000000e+00 : f32
    %23 = vector.broadcast %cst_19 : f32 to vector<32x256xf32>
    %24 = arith.maximumf %22, %23 : vector<32x256xf32>
    %25 = arith.truncf %24 : vector<32x256xf32> to vector<32x256xbf16>
    %cst_20 = arith.constant dense<0.000000e+00> : vector<1x256xf32>
    %26 = tpu.matmul %2, %25, %cst_20 {dimension_numbers = #tpu.dot_dimension_numbers<[1], [0], [0], [1], [0, 0, 1, 1], [], []>} : vector<1x32xbf16>, vector<32x256xbf16>, vector<1x256xf32> -> vector<1x256xf32>
    %27 = vector.broadcast %3 : vector<1x1xf32> to vector<1x256xf32>
    %28 = arith.addf %26, %27 : vector<1x256xf32>
    %c0_21 = arith.constant 0 : index
    %c0_22 = arith.constant 0 : index
    %c0_23 = arith.constant 0 : index
    %29 = vector.load %arg9[%c0_21, %c0_22, %c0_23] : memref<1x1x256xf32, #tpu.memory_space<vmem>>, vector<1x1x256xf32>
    %30 = vector.shape_cast %29 : vector<1x1x256xf32> to vector<1x256xf32>
    %31 = vector.shape_cast %28 : vector<1x256xf32> to vector<1x1x256xf32>
    tpu.vector_store %arg9[%c0_21, %c0_22, %c0_23], %31 {strides = array<i32>} : memref<1x1x256xf32, #tpu.memory_space<vmem>>, vector<1x1x256xf32>,
    return
  }
  func.func @transform_0(%arg0: i32, %arg1: i32) -> (i32, i32, i32) {
    %c0_i32 = arith.constant 0 : i32
    %c0_i32_0 = arith.constant 0 : i32
    return %arg0, %c0_i32, %arg1 : i32, i32, i32
  }
  func.func @transform_1(%arg0: i32, %arg1: i32) -> (i32, i32, i32) {
    %c0_i32 = arith.constant 0 : i32
    %c0_i32_0 = arith.constant 0 : i32
    return %arg0, %c0_i32, %arg1 : i32, i32, i32
  }
  func.func @transform_2(%arg0: i32, %arg1: i32) -> (i32, i32) {
    %c0_i32 = arith.constant 0 : i32
    %c0_i32_0 = arith.constant 0 : i32
    %c0_i32_1 = arith.constant 0 : i32
    return %c0_i32, %c0_i32_0 : i32, i32
  }
  func.func @transform_3(%arg0: i32, %arg1: i32) -> (i32, i32) {
    %c0_i32 = arith.constant 0 : i32
    %c0_i32_0 = arith.constant 0 : i32
    %c0_i32_1 = arith.constant 0 : i32
    return %c0_i32, %c0_i32_0 : i32, i32
  }
  func.func @transform_4(%arg0: i32, %arg1: i32) -> (i32, i32) {
    %c0_i32 = arith.constant 0 : i32
    %c0_i32_0 = arith.constant 0 : i32
    %c0_i32_1 = arith.constant 0 : i32
    return %c0_i32, %c0_i32_0 : i32, i32
  }
  func.func @transform_5(%arg0: i32, %arg1: i32) -> (i32, i32) {
    %c0_i32 = arith.constant 0 : i32
    %c0_i32_0 = arith.constant 0 : i32
    %c0_i32_1 = arith.constant 0 : i32
    return %c0_i32, %c0_i32_0 : i32, i32
  }
  func.func @transform_6(%arg0: i32, %arg1: i32) -> (i32, i32, i32) {
    %c0_i32 = arith.constant 0 : i32
    %c0_i32_0 = arith.constant 0 : i32
    return %arg0, %c0_i32, %arg1 : i32, i32, i32
  }
  func.func @transform_7(%arg0: i32, %arg1: i32) -> (i32, i32, i32) {
    %c0_i32 = arith.constant 0 : i32
    %c0_i32_0 = arith.constant 0 : i32
    return %arg0, %c0_i32, %arg1 : i32, i32, i32
  }
}

module attributes {stable_mosaic.version = 11 : i64} {
  func.func @_disparity_kernel(%arg0: i32, %arg1: i32, %arg2: memref<1x16x16xf32, #tpu.memory_space<vmem>>, %arg3: memref<1x16x16xf32, #tpu.memory_space<vmem>>, %arg4: memref<1x16x16xf32, #tpu.memory_space<vmem>>) attributes {dimension_semantics = [#tpu.dimension_semantics<parallel>, #tpu.dimension_semantics<parallel>], iteration_bounds = array<i64: 2, 1>, scalar_prefetch = 0 : i64, scratch_operands = 0 : i64, tpu.core_type = #tpu.core_type<tc>, window_params = [{transform_indices = @transform_0, window_bounds = array<i64: 1, 16, 16>}, {transform_indices = @transform_1, window_bounds = array<i64: 1, 16, 16>}, {transform_indices = @transform_2, window_bounds = array<i64: 1, 16, 16>}]} {
    %c0 = arith.constant 0 : index
    %c0_0 = arith.constant 0 : index
    %c0_1 = arith.constant 0 : index
    %0 = vector.load %arg2[%c0, %c0_0, %c0_1] : memref<1x16x16xf32, #tpu.memory_space<vmem>>, vector<1x16x16xf32>
    %c0_2 = arith.constant 0 : index
    %c0_3 = arith.constant 0 : index
    %c0_4 = arith.constant 0 : index
    %1 = vector.load %arg3[%c0_2, %c0_3, %c0_4] : memref<1x16x16xf32, #tpu.memory_space<vmem>>, vector<1x16x16xf32>
    %2 = tpu.iota {dimensions = array<i32: 2>} : vector<1x16x16xi32>
    %c0_i32 = arith.constant 0 : i32
    %3 = tpu.dynamic_rotate %1 by %c0_i32 dim 2 : vector<1x16x16xf32>, i32 -> vector<1x16x16xf32>
    %c0_i32_5 = arith.constant 0 : i32
    %4 = vector.broadcast %c0_i32_5 : i32 to vector<1x16x16xi32>
    %5 = arith.cmpi sge, %2, %4 : vector<1x16x16xi32>
    %6 = arith.subf %0, %3 : vector<1x16x16xf32>
    %7 = math.absf %6 : vector<1x16x16xf32>
    %cst = arith.constant 0.000000e+00 : f32
    %8 = vector.broadcast %cst : f32 to vector<1x16x16xf32>
    %9 = arith.subf %8, %7 : vector<1x16x16xf32>
    %cst_6 = arith.constant -1.000000e+09 : f32
    %10 = vector.broadcast %cst_6 : f32 to vector<1x16x16xf32>
    %11 = arith.select %5, %9, %10 : vector<1x16x16xi1>, vector<1x16x16xf32>
    %cst_7 = arith.constant 1.000000e+00 : f32
    %12 = vector.broadcast %cst_7 : f32 to vector<1x16x16xf32>
    %cst_8 = arith.constant 0.000000e+00 : f32
    %13 = vector.broadcast %cst_8 : f32 to vector<1x16x16xf32>
    %c1_i32 = arith.constant 1 : i32
    %14 = tpu.dynamic_rotate %1 by %c1_i32 dim 2 : vector<1x16x16xf32>, i32 -> vector<1x16x16xf32>
    %c1_i32_9 = arith.constant 1 : i32
    %15 = vector.broadcast %c1_i32_9 : i32 to vector<1x16x16xi32>
    %16 = arith.cmpi sge, %2, %15 : vector<1x16x16xi32>
    %17 = arith.subf %0, %14 : vector<1x16x16xf32>
    %18 = math.absf %17 : vector<1x16x16xf32>
    %cst_10 = arith.constant 0.000000e+00 : f32
    %19 = vector.broadcast %cst_10 : f32 to vector<1x16x16xf32>
    %20 = arith.subf %19, %18 : vector<1x16x16xf32>
    %cst_11 = arith.constant -1.000000e+09 : f32
    %21 = vector.broadcast %cst_11 : f32 to vector<1x16x16xf32>
    %22 = arith.select %16, %20, %21 : vector<1x16x16xi1>, vector<1x16x16xf32>
    %23 = arith.maximumf %11, %22 : vector<1x16x16xf32>
    %24 = arith.subf %11, %23 : vector<1x16x16xf32>
    %25 = math.exp %24 : vector<1x16x16xf32>
    %26 = arith.subf %22, %23 : vector<1x16x16xf32>
    %27 = math.exp %26 : vector<1x16x16xf32>
    %28 = arith.mulf %25, %12 : vector<1x16x16xf32>
    %29 = arith.addf %28, %27 : vector<1x16x16xf32>
    %30 = arith.mulf %25, %13 : vector<1x16x16xf32>
    %cst_12 = arith.constant 1.000000e+00 : f32
    %31 = vector.broadcast %cst_12 : f32 to vector<1x16x16xf32>
    %32 = arith.mulf %27, %31 : vector<1x16x16xf32>
    %33 = arith.addf %30, %32 : vector<1x16x16xf32>
    %c2_i32 = arith.constant 2 : i32
    %34 = tpu.dynamic_rotate %1 by %c2_i32 dim 2 : vector<1x16x16xf32>, i32 -> vector<1x16x16xf32>
    %c2_i32_13 = arith.constant 2 : i32
    %35 = vector.broadcast %c2_i32_13 : i32 to vector<1x16x16xi32>
    %36 = arith.cmpi sge, %2, %35 : vector<1x16x16xi32>
    %37 = arith.subf %0, %34 : vector<1x16x16xf32>
    %38 = math.absf %37 : vector<1x16x16xf32>
    %cst_14 = arith.constant 0.000000e+00 : f32
    %39 = vector.broadcast %cst_14 : f32 to vector<1x16x16xf32>
    %40 = arith.subf %39, %38 : vector<1x16x16xf32>
    %cst_15 = arith.constant -1.000000e+09 : f32
    %41 = vector.broadcast %cst_15 : f32 to vector<1x16x16xf32>
    %42 = arith.select %36, %40, %41 : vector<1x16x16xi1>, vector<1x16x16xf32>
    %43 = arith.maximumf %23, %42 : vector<1x16x16xf32>
    %44 = arith.subf %23, %43 : vector<1x16x16xf32>
    %45 = math.exp %44 : vector<1x16x16xf32>
    %46 = arith.subf %42, %43 : vector<1x16x16xf32>
    %47 = math.exp %46 : vector<1x16x16xf32>
    %48 = arith.mulf %45, %29 : vector<1x16x16xf32>
    %49 = arith.addf %48, %47 : vector<1x16x16xf32>
    %50 = arith.mulf %45, %33 : vector<1x16x16xf32>
    %cst_16 = arith.constant 2.000000e+00 : f32
    %51 = vector.broadcast %cst_16 : f32 to vector<1x16x16xf32>
    %52 = arith.mulf %47, %51 : vector<1x16x16xf32>
    %53 = arith.addf %50, %52 : vector<1x16x16xf32>
    %c3_i32 = arith.constant 3 : i32
    %54 = tpu.dynamic_rotate %1 by %c3_i32 dim 2 : vector<1x16x16xf32>, i32 -> vector<1x16x16xf32>
    %c3_i32_17 = arith.constant 3 : i32
    %55 = vector.broadcast %c3_i32_17 : i32 to vector<1x16x16xi32>
    %56 = arith.cmpi sge, %2, %55 : vector<1x16x16xi32>
    %57 = arith.subf %0, %54 : vector<1x16x16xf32>
    %58 = math.absf %57 : vector<1x16x16xf32>
    %cst_18 = arith.constant 0.000000e+00 : f32
    %59 = vector.broadcast %cst_18 : f32 to vector<1x16x16xf32>
    %60 = arith.subf %59, %58 : vector<1x16x16xf32>
    %cst_19 = arith.constant -1.000000e+09 : f32
    %61 = vector.broadcast %cst_19 : f32 to vector<1x16x16xf32>
    %62 = arith.select %56, %60, %61 : vector<1x16x16xi1>, vector<1x16x16xf32>
    %63 = arith.maximumf %43, %62 : vector<1x16x16xf32>
    %64 = arith.subf %43, %63 : vector<1x16x16xf32>
    %65 = math.exp %64 : vector<1x16x16xf32>
    %66 = arith.subf %62, %63 : vector<1x16x16xf32>
    %67 = math.exp %66 : vector<1x16x16xf32>
    %68 = arith.mulf %65, %49 : vector<1x16x16xf32>
    %69 = arith.addf %68, %67 : vector<1x16x16xf32>
    %70 = arith.mulf %65, %53 : vector<1x16x16xf32>
    %cst_20 = arith.constant 3.000000e+00 : f32
    %71 = vector.broadcast %cst_20 : f32 to vector<1x16x16xf32>
    %72 = arith.mulf %67, %71 : vector<1x16x16xf32>
    %73 = arith.addf %70, %72 : vector<1x16x16xf32>
    %c4_i32 = arith.constant 4 : i32
    %74 = tpu.dynamic_rotate %1 by %c4_i32 dim 2 : vector<1x16x16xf32>, i32 -> vector<1x16x16xf32>
    %c4_i32_21 = arith.constant 4 : i32
    %75 = vector.broadcast %c4_i32_21 : i32 to vector<1x16x16xi32>
    %76 = arith.cmpi sge, %2, %75 : vector<1x16x16xi32>
    %77 = arith.subf %0, %74 : vector<1x16x16xf32>
    %78 = math.absf %77 : vector<1x16x16xf32>
    %cst_22 = arith.constant 0.000000e+00 : f32
    %79 = vector.broadcast %cst_22 : f32 to vector<1x16x16xf32>
    %80 = arith.subf %79, %78 : vector<1x16x16xf32>
    %cst_23 = arith.constant -1.000000e+09 : f32
    %81 = vector.broadcast %cst_23 : f32 to vector<1x16x16xf32>
    %82 = arith.select %76, %80, %81 : vector<1x16x16xi1>, vector<1x16x16xf32>
    %83 = arith.maximumf %63, %82 : vector<1x16x16xf32>
    %84 = arith.subf %63, %83 : vector<1x16x16xf32>
    %85 = math.exp %84 : vector<1x16x16xf32>
    %86 = arith.subf %82, %83 : vector<1x16x16xf32>
    %87 = math.exp %86 : vector<1x16x16xf32>
    %88 = arith.mulf %85, %69 : vector<1x16x16xf32>
    %89 = arith.addf %88, %87 : vector<1x16x16xf32>
    %90 = arith.mulf %85, %73 : vector<1x16x16xf32>
    %cst_24 = arith.constant 4.000000e+00 : f32
    %91 = vector.broadcast %cst_24 : f32 to vector<1x16x16xf32>
    %92 = arith.mulf %87, %91 : vector<1x16x16xf32>
    %93 = arith.addf %90, %92 : vector<1x16x16xf32>
    %c5_i32 = arith.constant 5 : i32
    %94 = tpu.dynamic_rotate %1 by %c5_i32 dim 2 : vector<1x16x16xf32>, i32 -> vector<1x16x16xf32>
    %c5_i32_25 = arith.constant 5 : i32
    %95 = vector.broadcast %c5_i32_25 : i32 to vector<1x16x16xi32>
    %96 = arith.cmpi sge, %2, %95 : vector<1x16x16xi32>
    %97 = arith.subf %0, %94 : vector<1x16x16xf32>
    %98 = math.absf %97 : vector<1x16x16xf32>
    %cst_26 = arith.constant 0.000000e+00 : f32
    %99 = vector.broadcast %cst_26 : f32 to vector<1x16x16xf32>
    %100 = arith.subf %99, %98 : vector<1x16x16xf32>
    %cst_27 = arith.constant -1.000000e+09 : f32
    %101 = vector.broadcast %cst_27 : f32 to vector<1x16x16xf32>
    %102 = arith.select %96, %100, %101 : vector<1x16x16xi1>, vector<1x16x16xf32>
    %103 = arith.maximumf %83, %102 : vector<1x16x16xf32>
    %104 = arith.subf %83, %103 : vector<1x16x16xf32>
    %105 = math.exp %104 : vector<1x16x16xf32>
    %106 = arith.subf %102, %103 : vector<1x16x16xf32>
    %107 = math.exp %106 : vector<1x16x16xf32>
    %108 = arith.mulf %105, %89 : vector<1x16x16xf32>
    %109 = arith.addf %108, %107 : vector<1x16x16xf32>
    %110 = arith.mulf %105, %93 : vector<1x16x16xf32>
    %cst_28 = arith.constant 5.000000e+00 : f32
    %111 = vector.broadcast %cst_28 : f32 to vector<1x16x16xf32>
    %112 = arith.mulf %107, %111 : vector<1x16x16xf32>
    %113 = arith.addf %110, %112 : vector<1x16x16xf32>
    %c6_i32 = arith.constant 6 : i32
    %114 = tpu.dynamic_rotate %1 by %c6_i32 dim 2 : vector<1x16x16xf32>, i32 -> vector<1x16x16xf32>
    %c6_i32_29 = arith.constant 6 : i32
    %115 = vector.broadcast %c6_i32_29 : i32 to vector<1x16x16xi32>
    %116 = arith.cmpi sge, %2, %115 : vector<1x16x16xi32>
    %117 = arith.subf %0, %114 : vector<1x16x16xf32>
    %118 = math.absf %117 : vector<1x16x16xf32>
    %cst_30 = arith.constant 0.000000e+00 : f32
    %119 = vector.broadcast %cst_30 : f32 to vector<1x16x16xf32>
    %120 = arith.subf %119, %118 : vector<1x16x16xf32>
    %cst_31 = arith.constant -1.000000e+09 : f32
    %121 = vector.broadcast %cst_31 : f32 to vector<1x16x16xf32>
    %122 = arith.select %116, %120, %121 : vector<1x16x16xi1>, vector<1x16x16xf32>
    %123 = arith.maximumf %103, %122 : vector<1x16x16xf32>
    %124 = arith.subf %103, %123 : vector<1x16x16xf32>
    %125 = math.exp %124 : vector<1x16x16xf32>
    %126 = arith.subf %122, %123 : vector<1x16x16xf32>
    %127 = math.exp %126 : vector<1x16x16xf32>
    %128 = arith.mulf %125, %109 : vector<1x16x16xf32>
    %129 = arith.addf %128, %127 : vector<1x16x16xf32>
    %130 = arith.mulf %125, %113 : vector<1x16x16xf32>
    %cst_32 = arith.constant 6.000000e+00 : f32
    %131 = vector.broadcast %cst_32 : f32 to vector<1x16x16xf32>
    %132 = arith.mulf %127, %131 : vector<1x16x16xf32>
    %133 = arith.addf %130, %132 : vector<1x16x16xf32>
    %c7_i32 = arith.constant 7 : i32
    %134 = tpu.dynamic_rotate %1 by %c7_i32 dim 2 : vector<1x16x16xf32>, i32 -> vector<1x16x16xf32>
    %c7_i32_33 = arith.constant 7 : i32
    %135 = vector.broadcast %c7_i32_33 : i32 to vector<1x16x16xi32>
    %136 = arith.cmpi sge, %2, %135 : vector<1x16x16xi32>
    %137 = arith.subf %0, %134 : vector<1x16x16xf32>
    %138 = math.absf %137 : vector<1x16x16xf32>
    %cst_34 = arith.constant 0.000000e+00 : f32
    %139 = vector.broadcast %cst_34 : f32 to vector<1x16x16xf32>
    %140 = arith.subf %139, %138 : vector<1x16x16xf32>
    %cst_35 = arith.constant -1.000000e+09 : f32
    %141 = vector.broadcast %cst_35 : f32 to vector<1x16x16xf32>
    %142 = arith.select %136, %140, %141 : vector<1x16x16xi1>, vector<1x16x16xf32>
    %143 = arith.maximumf %123, %142 : vector<1x16x16xf32>
    %144 = arith.subf %123, %143 : vector<1x16x16xf32>
    %145 = math.exp %144 : vector<1x16x16xf32>
    %146 = arith.subf %142, %143 : vector<1x16x16xf32>
    %147 = math.exp %146 : vector<1x16x16xf32>
    %148 = arith.mulf %145, %129 : vector<1x16x16xf32>
    %149 = arith.addf %148, %147 : vector<1x16x16xf32>
    %150 = arith.mulf %145, %133 : vector<1x16x16xf32>
    %cst_36 = arith.constant 7.000000e+00 : f32
    %151 = vector.broadcast %cst_36 : f32 to vector<1x16x16xf32>
    %152 = arith.mulf %147, %151 : vector<1x16x16xf32>
    %153 = arith.addf %150, %152 : vector<1x16x16xf32>
    %154 = tpu.reciprocal %149 {approx = true} : vector<1x16x16xf32> -> vector<1x16x16xf32>
    %155 = arith.mulf %153, %154 : vector<1x16x16xf32>
    %c0_37 = arith.constant 0 : index
    %c0_38 = arith.constant 0 : index
    %c0_39 = arith.constant 0 : index
    %156 = vector.load %arg4[%c0_37, %c0_38, %c0_39] : memref<1x16x16xf32, #tpu.memory_space<vmem>>, vector<1x16x16xf32>
    tpu.vector_store %arg4[%c0_37, %c0_38, %c0_39], %155 {strides = array<i32>} : memref<1x16x16xf32, #tpu.memory_space<vmem>>, vector<1x16x16xf32>,
    return
  }
  func.func @transform_0(%arg0: i32, %arg1: i32) -> (i32, i32, i32) {
    %c0_i32 = arith.constant 0 : i32
    %c0_i32_0 = arith.constant 0 : i32
    return %arg0, %arg1, %c0_i32 : i32, i32, i32
  }
  func.func @transform_1(%arg0: i32, %arg1: i32) -> (i32, i32, i32) {
    %c0_i32 = arith.constant 0 : i32
    %c0_i32_0 = arith.constant 0 : i32
    return %arg0, %arg1, %c0_i32 : i32, i32, i32
  }
  func.func @transform_2(%arg0: i32, %arg1: i32) -> (i32, i32, i32) {
    %c0_i32 = arith.constant 0 : i32
    %c0_i32_0 = arith.constant 0 : i32
    return %arg0, %arg1, %c0_i32 : i32, i32, i32
  }
}

</mosaic_0001>

<bundles_post_ra>
// kernel: squeeze.2
= control target key start
LH: loop header
LB: loop body
LE: loop exit
PB: predicated region body
PF: predicated region fallthrough
CT: control target
= control target key end

     0   :  { %vm11_vm0 = vcmask 130048   ;;  %s77_s10 = smov 80   ;;  %s78_s15 = smov 96   ;;  %s135_s0 = inlined_call_operand.vmem [shape: f32[2,256], index: 0, kind: input, shape index: {}]   ;;  %s136_s1 = inlined_call_operand.vmem [shape: f32[2,16,16], index: 1, kind: output, shape index: {}]  }
   0x1   :  { %v60_v0 = vld [vmem:[%s135_s0 + $0x2] sm:$0x3]  ;;  %v8_v1 = vld [vmem:[%s135_s0] sm:$0x3]  ;;  %s76_s0 = smov 112   ;;  %s79_s16 = smov 64  }
   0x2   :  { %7 = vst [vmem:[#allocation0 + $0x8] sm:$0x3] %v60_v0  ;;  %9 = vst [vmem:[#allocation0] sm:$0x3] %v8_v1  ;;  %s80_s17 = smov 48   ;;  %s81_s18 = smov 32  }
   0x3   :  { %s82_s19 = smov 16  }
   0x9   :  { %v18_v2 = vld.sshfl [vmem:[#allocation0] sm:$0xff pattern:$0x99999180]  }
   0xa   :  { %v10_v3 = vld [vmem:[#allocation0] sm:$0x3]   ;;  %19 = vrot.lane.b32.xlu0 %v18_v2, %s76_s0  ;;  %31 = vrot.lane.b32.xlu1 %v18_v2, %s77_s10  ;;  %v14_v4 = vld [vmem:[#allocation0 + $0x8] sm:$0x3]  }
   0xb   :  { %12 = vst.msk [vmem:[%s136_s1] ss:$16 sm:$0x3] %vm11_vm0, %v10_v3   ;;  %61 = vst.msk [vmem:[%s136_s1 + $0x8] ss:$16 sm:$0x3] %vm11_vm0, %v14_v4  }
   0xe   :  { %25 = vrot.lane.b32.xlu0 %v18_v2, %s78_s15  ;;  %37 = vrot.lane.b32.xlu1 %v18_v2, %s79_s16 }
  0x12   :  { %43 = vrot.lane.b32.xlu0 %v18_v2, %s80_s17  ;;  %49 = vrot.lane.b32.xlu1 %v18_v2, %s81_s18 }
  0x16   :  { %55 = vrot.lane.b32.xlu0 %v18_v2, %s82_s19 }
  0x7c   :  { %v20_v5 = vpop.permute.xlu0 %19   ;;  %v32_v6 = vpop.permute.xlu1 %31  }
  0x7d   :  { %62 = vst.msk [vmem:[%s136_s1 + $0x1] ss:$8 sm:$0xf] %vm11_vm0, %v20_v5   ;;  %64 = vst.msk [vmem:[%s136_s1 + $0x3] ss:$8 sm:$0xf] %vm11_vm0, %v32_v6  }
  0x80   :  { %v26_v7 = vpop.permute.xlu0 %25   ;;  %v38_v8 = vpop.permute.xlu1 %37  }
  0x81   :  { %63 = vst.msk [vmem:[%s136_s1 + $0x2] ss:$8 sm:$0xf] %vm11_vm0, %v26_v7   ;;  %65 = vst.msk [vmem:[%s136_s1 + $0x4] ss:$8 sm:$0xf] %vm11_vm0, %v38_v8  }
  0x84   :  { %v44_v9 = vpop.permute.xlu0 %43   ;;  %v50_v10 = vpop.permute.xlu1 %49  }
  0x85   :  { %66 = vst.msk [vmem:[%s136_s1 + $0x5] ss:$8 sm:$0xf] %vm11_vm0, %v44_v9   ;;  %67 = vst.msk [vmem:[%s136_s1 + $0x6] ss:$8 sm:$0xf] %vm11_vm0, %v50_v10  }
  0x88   :  { %v56_v11 = vpop.permute.xlu0 %55  }
  0x89   :  { %68 = vst.msk [vmem:[%s136_s1 + $0x7] ss:$8 sm:$0xf] %vm11_vm0, %v56_v11  }

// kernel: event_stereo_forward.3
= control target key start
LH: loop header
LB: loop body
LE: loop exit
PB: predicated region body
PF: predicated region fallthrough
CT: control target
= control target key end

     0   :  { %7 = vsyncpa [#allocation3], 0  ;;  %s1073_s0 = inlined_call_operand.vmem [shape: f32[2,16,16], index: 0, kind: input, shape index: {}]   ;;  %s1074_s1 = inlined_call_operand.vmem [shape: f32[2,16,16], index: 1, kind: input, shape index: {}]   ;;  %s1075_s2 = inlined_call_operand.hbm [shape: f32[2,16,16], index: 2, kind: output, shape index: {}]  }
   0x1   :  { %9 = vsyncpa [#allocation3 + $0x1], 0  ;;  %s885_s9 = smov 0   ;;  %s887_s10 = smov 0  }
   0x2   :  { %s889_s11 = smov 0   ;;  %s891_s12 = smov 0  }
   0x3   :  { %s893_s13 = smov 0   ;;  %s895_s14 = smov 0  }
   0x4 LB: > { %s634_s15 = sadd.s32 4294967295, %s856_s14   ;;  %s635_s16 = sadd.s32 4294967294, %s856_s14   ;;  %s856_s14 = sphi %s895_s14, %s15_s14   ;;  %s852_s13 = sphi %s893_s13, %s1082_s13   ;;  %s848_s12 = sphi %s891_s12, %s1081_s12   ;;  %s844_s11 = sphi %s889_s11, %s1080_s11   ;;  %s840_s10 = sphi %s887_s10, %s1079_s10   ;;  %s836_s9 = sphi %s885_s9, %s1078_s9  }
   0x5   : > { %s27_s17 = sadd.s32 1, %s852_s13  ;;  %s92_s18 = sadd.s32 1, %s844_s11 }
   0x6   : > { %p29_p0 = scmp.ge.s32.totalorder %s27_s17, 2  ;;  %p102_p1 = scmp.ne.s32.totalorder %s844_s11, %s840_s10 }
   0x7   : > { %p103_p2 = scmp.eq.s32.totalorder %s634_s15, 1  ;;  %p108_p3 = scmp.ne.s32.totalorder %s840_s10, %s836_s9 }
   0x8   : > { %s1084_s17 = smov (%p29_p0, %s27_s17), 0  ;;  %p109_p5 = scmp.eq.s32.totalorder %s635_s16, 1 }
   0x9   : > { %p925_p4 = por %p103_p2, %p102_p1  ;;  %s87_s20 = ssub.s32 %s852_s13, %s1084_s17 }
   0xa   : > { %p638_p6 = scmp.ge.s32.totalorder %s856_s14, 1  ;;  %p90_p7 = scmp.eq.s32.totalorder %s87_s20, 0 }
   0xb   : > { %p932_p8 = por %p109_p5, %p108_p3  ;;  %p153_p9 = scmp.lt.s32.totalorder %s856_s14, 3 }
   0xc   : > { %s938_s22 = scalar_select %p90_p7, %s844_s11, %s92_s18  }
   0xd   : > { %p154_p10 = pnand %p638_p6, %p153_p9 }
   0xe   : > { %p189_p11 = scmp.lt.s32.totalorder (!%p154_p10), %s848_s12, 1  ;;  %s858_s28 = smov (!%p154_p10), 16   ;;  %vm215_vm0 = vcmask (!%p154_p10), 1047680   ;;  %v213_v11 = vlaneseq (!%p154_p10)  ;;  %vm518_vm8 = vcmask (!%p154_p10), 130048  }
   0xf   : > { %157 = sbr.rel (%p154_p10) target bundleno = 477 (0x1dd), region = 28  ;;  %s859_s29 = smov (!%p154_p10), 113  }
  0x10   : > { %s860_s30 = smov (!%p154_p10), 112   ;;  %s861_s3 = smov (!%p154_p10), 114   ;;  %v960_v15 = vand.u32 (!%p154_p10), 127, %v213_v11 }
  0x11   : > { %s862_s4 = smov (!%p154_p10), 115   ;;  %s863_s5 = smov (!%p154_p10), 116  }
  0x12   : > { %s864_s6 = smov (!%p154_p10), 117   ;;  %s865_s7 = smov (!%p154_p10), 118   ;;  %vm245_vm1 = vcmp.ge.s32.totalorder (!%p154_p10), %v960_v15, 1  ;;  %vm280_vm2 = vcmp.ge.s32.totalorder (!%p154_p10), %v960_v15, 2  ;;  %vm319_vm3 = vcmp.ge.s32.totalorder (!%p154_p10), %v960_v15, 3  ;;  %vm358_vm4 = vcmp.ge.s32.totalorder (!%p154_p10), %v960_v15, 4 }
  0x13   : > { %s866_s8 = smov (!%p154_p10), 119   ;;  %vm397_vm5 = vcmp.ge.s32.totalorder (!%p154_p10), %v960_v15, 5  ;;  %vm436_vm6 = vcmp.ge.s32.totalorder (!%p154_p10), %v960_v15, 6  ;;  %vm475_vm7 = vcmp.ge.s32.totalorder (!%p154_p10), %v960_v15, 7  ;;  %s185_s20 = sand.u32 (!%p154_p10), 1, %s840_s10  }
  0x16   : > { %s942_s23 = scalar_select %p189_p11, %s848_s12, 1 }
  0x18   : > { %s649_s24 = sshll.u32 %s942_s23, 4  ;;  %s639_s23 = sshll.u32 %s185_s20, 4 }
  0x19   : > { %s206_s27 = scalar_lea.vmem %s1074_s1, %s649_s24  ;;  %s196_s18 = scalar_lea.vmem %s1073_s0, %s649_s24 }
  0x1a   : > { %v211_v0 = vld [vmem:[%s206_s27] sm:$0xff]  ;;  %v212_v1 = vld [vmem:[%s206_s27 + $0x8] sm:$0xff]  ;;  %s651_s24 = sshll.u32 %s848_s12, 8  ;;  %s187_s25 = scalar_lea.vmem [#allocation2], %s639_s23 }
  0x1b   : > { %216 = vrot.lane.b32.xlu0 %v211_v0, %s858_s28  ;;  %v955_v10 = vld [vmem:[%s196_s18] sm:$0xff]  ;;  %v958_v14 = vld [vmem:[%s196_s18 + $0x8] sm:$0xff]  ;;  %s537_s26 = sshll.u32 %s187_s25, 4  ;;  %s1025_s26 = int_to_ptr.vmem [resolvable:$true] %s537_s26 }
  0x1c   : > { %s778_s12 = scalar_lea.vmem %s1025_s26, 256 }
  0x1d   : > { %p779_p12 = scmp.ne.s32.totalorder %s1025_s26, %s778_s12 }
  0x1f   : > { %219 = vrot.lane.b32.xlu0 %v212_v1, %s858_s28  ;;  %p780_p13 = pnand %p779_p12, %p925_p4 }
  0x21   : > { %p781_p0 = pneg %p780_p13 }
  0x8d   : > { %v217_v2 = vpop.permute.xlu0 %216 }
  0x8e   : > { %v218_v3 = vsel %vm215_vm0, %v217_v2, %v211_v0 }
  0x8f   : > { %222 = vrot.lane.b32.xlu1 %v218_v3, %s858_s28 }
  0x91   : > { %v220_v4 = vpop.permute.xlu0 %219 }
  0x92   : > { %v221_v5 = vsel %vm215_vm0, %v220_v4, %v212_v1 }
  0x93   : > { %224 = vrot.lane.b32.xlu1 %v221_v5, %s858_s28 }
 0x101   : > { %v223_v6 = vpop.permute.xlu1 %222 }
 0x102   : > { %v226_v7 = vsel %vm215_vm0, %v223_v6, %v211_v0 }
 0x103   : > { %246 = vrot.lane.b32.xlu0 %v226_v7, %s859_s29 }
 0x105   : > { %v225_v8 = vpop.permute.xlu1 %224 }
 0x106   : > { %v227_v9 = vsel %vm215_vm0, %v225_v8, %v212_v1 }
 0x107   : > { %231 = vrot.lane.b32.xlu0 %v226_v7, %s860_s30  ;;  %248 = vrot.lane.b32.xlu1 %v227_v9, %s859_s29  ;;  %s1023_s29 = scalar_lea.hbm %s1075_s2, %s651_s24 }
 0x10b   : > { %281 = vrot.lane.b32.xlu0 %v226_v7, %s861_s3  ;;  %233 = vrot.lane.b32.xlu1 %v227_v9, %s860_s30  ;;  %s1027_s30 = scalar_lea.sflag [#allocation3], %s185_s20 }
 0x10f   : > { %320 = vrot.lane.b32.xlu0 %v226_v7, %s862_s4  ;;  %283 = vrot.lane.b32.xlu1 %v227_v9, %s861_s3  ;;  %s867_s3 = smov [#allocation2]  }
 0x113   : > { %359 = vrot.lane.b32.xlu0 %v226_v7, %s863_s5  ;;  %322 = vrot.lane.b32.xlu1 %v227_v9, %s862_s4  ;;  %s782_s4 = sshll.u32 %s867_s3, 4  ;;  %s783_s4 = int_to_ptr.vmem [resolvable:$false] %s782_s4 }
 0x114   : > { %p785_p1 = scmp.lt.s32.totalorder %s1025_s26, %s783_s4 }
 0x117   : > { %398 = vrot.lane.b32.xlu0 %v226_v7, %s864_s6  ;;  %361 = vrot.lane.b32.xlu1 %v227_v9, %s863_s5  ;;  %s784_s5 = scalar_lea.vmem %s783_s4, 512 }
 0x118   : > { %p786_p2 = scmp.lt.s32.totalorder %s784_s5, %s778_s12 }
 0x11a   : > { %p787_p3 = por %p786_p2, %p785_p1 }
 0x11b   : > { %437 = vrot.lane.b32.xlu0 %v226_v7, %s865_s7  ;;  %400 = vrot.lane.b32.xlu1 %v227_v9, %s864_s6 }
 0x11c   : > { %p788_p5 = pnand %p787_p3, %p781_p0 }
 0x11f   : > { %476 = vrot.lane.b32.xlu0 %v226_v7, %s866_s8  ;;  %439 = vrot.lane.b32.xlu1 %v227_v9, %s865_s7 }
 0x123   : > { %478 = vrot.lane.b32.xlu1 %v227_v9, %s866_s8 }
 0x175   : > { %v247_v12 = vpop.permute.xlu0 %246 }
 0x176   : > { %v252_v13 = vsub.f32 %v955_v10, %v247_v12 }
 0x178   : > { %v254_v16 = vand.u32 2147483647, %v252_v13 }
 0x179   : > { %v249_v17 = vpop.permute.xlu1 %248  ;;  %v232_v18 = vpop.permute.xlu0 %231 }
 0x17a   : > { %v253_v19 = vsub.f32 %v958_v14, %v249_v17  ;;  %v237_v20 = vsub.f32 %v955_v10, %v232_v18  ;;  %v256_v21 = vsub.f32 0.0, %v254_v16 }
 0x17c   : > { %v255_v22 = vand.u32 2147483647, %v253_v19  ;;  %v239_v23 = vand.u32 2147483647, %v237_v20  ;;  %v258_v29 = vsel %vm245_vm1, %v256_v21, -1e+09 }
 0x17d   : > { %v234_v24 = vpop.permute.xlu1 %233  ;;  %v282_v25 = vpop.permute.xlu0 %281 }
 0x17e   : > { %v241_v26 = vsub.f32 0.0, %v239_v23  ;;  %v238_v27 = vsub.f32 %v958_v14, %v234_v24  ;;  %v287_v28 = vsub.f32 %v955_v10, %v282_v25  ;;  %v257_v30 = vsub.f32 0.0, %v255_v22 }
 0x180   : > { %v260_v31 = vmax.f32 %v241_v26, %v258_v29  ;;  %v240_v32 = vand.u32 2147483647, %v238_v27  ;;  %v289_v33 = vand.u32 2147483647, %v287_v28  ;;  %v259_v40 = vsel %vm245_vm1, %v257_v30, -1e+09 }
 0x181   : > { %v284_v34 = vpop.permute.xlu1 %283  ;;  %v321_v35 = vpop.permute.xlu0 %320 }
 0x182   : > { %v262_v36 = vsub.f32 %v241_v26, %v260_v31  ;;  %v268_v37 = vsub.f32 %v258_v29, %v260_v31  ;;  %v242_v38 = vsub.f32 0.0, %v240_v32  ;;  %v291_v39 = vsub.f32 0.0, %v289_v33 }
 0x183   : > { %v288_v41 = vsub.f32 %v958_v14, %v284_v34  ;;  %v326_v42 = vsub.f32 %v955_v10, %v321_v35 }
 0x184   : > { %v264_v43 = vmul.f32 1.442695, %v262_v36  ;;  %v270_v44 = vmul.f32 1.442695, %v268_v37  ;;  %v261_v45 = vmax.f32 %v242_v38, %v259_v40  ;;  %v293_v46 = vsel %vm280_vm2, %v291_v39, -1e+09 }
 0x185   : > { %v295_v47 = vmax.f32 %v260_v31, %v293_v46  ;;  %v290_v48 = vand.u32 2147483647, %v288_v41  ;;  %v328_v49 = vand.u32 2147483647, %v326_v42  ;;  %v323_v50 = vpop.permute.xlu1 %322  ;;  %v360_v51 = vpop.permute.xlu0 %359 }
 0x186   : > { %718 = vpow2.f32 %v264_v43  ;;  %v263_v52 = vsub.f32 %v242_v38, %v261_v45  ;;  %v269_v53 = vsub.f32 %v259_v40, %v261_v45  ;;  %v327_v54 = vsub.f32 %v958_v14, %v323_v50 }
 0x187   : > { %720 = vpow2.f32 %v270_v44  ;;  %v297_v55 = vsub.f32 %v260_v31, %v295_v47  ;;  %v303_v56 = vsub.f32 %v293_v46, %v295_v47  ;;  %v292_v57 = vsub.f32 0.0, %v290_v48 }
 0x188   : > { %v266_v58 = vmul.f32 1.442695, %v263_v52  ;;  %v272_v59 = vmul.f32 1.442695, %v269_v53  ;;  %v330_v60 = vsub.f32 0.0, %v328_v49  ;;  %v365_v61 = vsub.f32 %v955_v10, %v360_v51 }
 0x189   : > { %v299_v62 = vmul.f32 1.442695, %v297_v55  ;;  %v305_v63 = vmul.f32 1.442695, %v303_v56  ;;  %v294_v0 = vsel %vm280_vm2, %v292_v57, -1e+09  ;;  %v362_v1 = vpop.permute.xlu1 %361  ;;  %v399_v8 = vpop.permute.xlu0 %398 }
 0x18a   : > { %722 = vpow2.f32 %v266_v58  ;;  %v296_v2 = vmax.f32 %v261_v45, %v294_v0  ;;  %v332_v3 = vsel %vm319_vm3, %v330_v60, -1e+09  ;;  %v329_v4 = vand.u32 2147483647, %v327_v54 }
 0x18b   : > { %724 = vpow2.f32 %v272_v59  ;;  %v334_v5 = vmax.f32 %v295_v47, %v332_v3  ;;  %v367_v6 = vand.u32 2147483647, %v365_v61  ;;  %v366_v7 = vsub.f32 %v958_v14, %v362_v1 }
 0x18c   : > { %726 = vpow2.f32 %v299_v62  ;;  %v298_v9 = vsub.f32 %v261_v45, %v296_v2  ;;  %v304_v11 = vsub.f32 %v294_v0, %v296_v2  ;;  %v331_v12 = vsub.f32 0.0, %v329_v4 }
 0x18d   : > { %728 = vpow2.f32 %v305_v63  ;;  %v336_v13 = vsub.f32 %v295_v47, %v334_v5  ;;  %v342_v16 = vsub.f32 %v332_v3, %v334_v5  ;;  %v369_v17 = vsub.f32 0.0, %v367_v6  ;;  %v401_v35 = vpop.permute.xlu1 %400  ;;  %v438_v36 = vpop.permute.xlu0 %437 }
 0x18e   : > { %v301_v18 = vmul.f32 1.442695, %v298_v9  ;;  %v307_v19 = vmul.f32 1.442695, %v304_v11  ;;  %v333_v20 = vsel %vm319_vm3, %v331_v12, -1e+09  ;;  %v404_v21 = vsub.f32 %v955_v10, %v399_v8 }
 0x18f   : > { %v338_v22 = vmul.f32 1.442695, %v336_v13  ;;  %v335_v23 = vmax.f32 %v296_v2, %v333_v20  ;;  %v371_v24 = vsel %vm358_vm4, %v369_v17, -1e+09  ;;  %v368_v27 = vand.u32 2147483647, %v366_v7 }
 0x190   : > { %v719_v25 = vpop.eup %718  ;;  %730 = vpow2.f32 %v301_v18  ;;  %v373_v26 = vmax.f32 %v334_v5, %v371_v24  ;;  %v406_v28 = vand.u32 2147483647, %v404_v21  ;;  %v344_v33 = vmul.f32 1.442695, %v342_v16 }
 0x191   : > { %v721_v29 = vpop.eup %720  ;;  %732 = vpow2.f32 %v307_v19  ;;  %v337_v30 = vsub.f32 %v296_v2, %v335_v23  ;;  %v343_v31 = vsub.f32 %v333_v20, %v335_v23  ;;  %v276_v32 = vmul.f32 0.0, %v719_v25  ;;  %v440_v8 = vpop.permute.xlu1 %439 }
 0x192   : > { %734 = vpow2.f32 %v338_v22  ;;  %v375_v34 = vsub.f32 %v334_v5, %v373_v26  ;;  %v381_v38 = vsub.f32 %v371_v24, %v373_v26  ;;  %v274_v40 = vadd.f32 %v721_v29, %v719_v25 }
 0x193   : > { %v340_v37 = vmul.f32 1.442695, %v337_v30  ;;  %v370_v42 = vsub.f32 0.0, %v368_v27  ;;  %v408_v43 = vsub.f32 0.0, %v406_v28  ;;  %v346_v45 = vmul.f32 1.442695, %v343_v31 }
 0x194   : > { %v723_v39 = vpop.eup %722  ;;  %v377_v41 = vmul.f32 1.442695, %v375_v34  ;;  %v405_v46 = vsub.f32 %v958_v14, %v401_v35  ;;  %v443_v47 = vsub.f32 %v955_v10, %v438_v36  ;;  %v278_v49 = vadd.f32 %v721_v29, %v276_v32  ;;  %v477_v36 = vpop.permute.xlu0 %476 }
 0x195   : > { %v725_v44 = vpop.eup %724  ;;  %736 = vpow2.f32 %v340_v37  ;;  %v372_v50 = vsel %vm358_vm4, %v370_v42, -1e+09  ;;  %v410_v51 = vsel %vm397_vm5, %v408_v43, -1e+09  ;;  %v277_v53 = vmul.f32 0.0, %v723_v39 }
 0x196   : > { %v727_v48 = vpop.eup %726  ;;  %738 = vpow2.f32 %v344_v33  ;;  %v383_v55 = vmul.f32 1.442695, %v381_v38  ;;  %v275_v56 = vadd.f32 %v725_v44, %v723_v39  ;;  %v374_v57 = vmax.f32 %v335_v23, %v372_v50 }
 0x197   : > { %v729_v52 = vpop.eup %728  ;;  %v309_v54 = vmul.f32 %v727_v48, %v274_v40  ;;  %740 = vpow2.f32 %v377_v41  ;;  %v412_v58 = vmax.f32 %v373_v26, %v410_v51  ;;  %v407_v60 = vand.u32 2147483647, %v405_v46  ;;  %v479_v41 = vpop.permute.xlu1 %478 }
 0x198   : > { %742 = vpow2.f32 %v346_v45  ;;  %v445_v61 = vand.u32 2147483647, %v443_v47  ;;  %v313_v63 = vmul.f32 %v727_v48, %v278_v49  ;;  %v315_v0 = vmul.f32 2.0, %v729_v52 }
 0x199   : > { %v311_v59 = vadd.f32 %v729_v52, %v309_v54  ;;  %v376_v1 = vsub.f32 %v335_v23, %v374_v57  ;;  %v414_v2 = vsub.f32 %v373_v26, %v412_v58  ;;  %v279_v4 = vadd.f32 %v725_v44, %v277_v53 }
 0x19a   : > { %v731_v62 = vpop.eup %730  ;;  %v382_v6 = vsub.f32 %v372_v50, %v374_v57  ;;  %v409_v7 = vsub.f32 0.0, %v407_v60  ;;  %v420_v12 = vsub.f32 %v410_v51, %v412_v58  ;;  %v447_v13 = vsub.f32 0.0, %v445_v61 }
 0x19b   : > { %v733_v3 = vpop.eup %732  ;;  %v310_v5 = vmul.f32 %v731_v62, %v275_v56  ;;  %v379_v11 = vmul.f32 1.442695, %v376_v1  ;;  %744 = vpow2.f32 %v383_v55  ;;  %v416_v18 = vmul.f32 1.442695, %v414_v2 }
 0x19c   : > { %v735_v9 = vpop.eup %734  ;;  %v317_v19 = vadd.f32 %v315_v0, %v313_v63  ;;  %v316_v20 = vmul.f32 2.0, %v733_v3  ;;  %v444_v21 = vsub.f32 %v958_v14, %v440_v8  ;;  %v314_v23 = vmul.f32 %v731_v62, %v279_v4 }
 0x19d   : > { %v312_v16 = vadd.f32 %v733_v3, %v310_v5  ;;  %v348_v17 = vmul.f32 %v735_v9, %v311_v59  ;;  %746 = vpow2.f32 %v379_v11  ;;  %v385_v24 = vmul.f32 1.442695, %v382_v6 }
 0x19e   : > { %v411_v25 = vsel %vm397_vm5, %v409_v7, -1e+09  ;;  %v449_v26 = vsel %vm436_vm6, %v447_v13, -1e+09  ;;  %748 = vpow2.f32 %v416_v18  ;;  %v422_v28 = vmul.f32 1.442695, %v420_v12 }
 0x19f   : > { %v737_v22 = vpop.eup %736  ;;  %v413_v31 = vmax.f32 %v374_v57, %v411_v25  ;;  %v1003_v32 = vmax.f32 %v412_v58, %v449_v26  ;;  %v352_v34 = vmul.f32 %v735_v9, %v317_v19  ;;  %v446_v35 = vand.u32 2147483647, %v444_v21 }
 0x1a0   : > { %v739_v27 = vpop.eup %738  ;;  %v349_v30 = vmul.f32 %v737_v22, %v312_v16  ;;  %v318_v38 = vadd.f32 %v316_v20, %v314_v23  ;;  %750 = vpow2.f32 %v385_v24  ;;  %v482_v48 = vsub.f32 %v955_v10, %v477_v36 }
 0x1a1   : > { %v350_v29 = vadd.f32 %v739_v27, %v348_v17  ;;  %v741_v33 = vpop.eup %740  ;;  %v415_v39 = vsub.f32 %v374_v57, %v413_v31  ;;  %v421_v40 = vsub.f32 %v411_v25, %v413_v31  ;;  %v354_v42 = vmul.f32 3.0, %v739_v27 }
 0x1a2   : > { %v743_v37 = vpop.eup %742  ;;  %752 = vpow2.f32 %v422_v28  ;;  %v453_v43 = vsub.f32 %v412_v58, %v1003_v32  ;;  %v448_v44 = vsub.f32 0.0, %v446_v35  ;;  %v459_v50 = vsub.f32 %v449_v26, %v1003_v32 }
 0x1a3   : > { %v351_v45 = vadd.f32 %v743_v37, %v349_v30  ;;  %v387_v46 = vmul.f32 %v741_v33, %v350_v29  ;;  %v418_v47 = vmul.f32 1.442695, %v415_v39  ;;  %v483_v52 = vsub.f32 %v958_v14, %v479_v41 }
 0x1a4   : > { %v455_v49 = vmul.f32 1.442695, %v453_v43  ;;  %v450_v51 = vsel %vm436_vm6, %v448_v44, -1e+09  ;;  %v424_v54 = vmul.f32 1.442695, %v421_v40  ;;  %v356_v58 = vadd.f32 %v354_v42, %v352_v34 }
 0x1a5   : > { %v745_v53 = vpop.eup %744  ;;  %754 = vpow2.f32 %v418_v47  ;;  %v452_v55 = vmax.f32 %v413_v31, %v450_v51  ;;  %v484_v56 = vand.u32 2147483647, %v482_v48  ;;  %v353_v59 = vmul.f32 %v737_v22, %v318_v38 }
 0x1a6   : > { %v389_v60 = vadd.f32 %v745_v53, %v387_v46  ;;  %756 = vpow2.f32 %v455_v49  ;;  %v485_v61 = vand.u32 2147483647, %v483_v52  ;;  %v355_v63 = vmul.f32 3.0, %v743_v37 }
 0x1a7   : > { %v747_v57 = vpop.eup %746  ;;  %v454_v10 = vsub.f32 %v413_v31, %v452_v55  ;;  %v460_v1 = vsub.f32 %v450_v51, %v452_v55  ;;  %v486_v2 = vsub.f32 0.0, %v484_v56  ;;  %758 = vpow2.f32 %v424_v54 }
 0x1a8   : > { %v749_v62 = vpop.eup %748  ;;  %v388_v0 = vmul.f32 %v747_v57, %v351_v45  ;;  %v461_v14 = vmul.f32 1.442695, %v459_v50  ;;  %v391_v4 = vmul.f32 %v741_v33, %v356_v58  ;;  %v487_v9 = vsub.f32 0.0, %v485_v61 }
 0x1a9   : > { %v457_v3 = vmul.f32 1.442695, %v454_v10  ;;  %v488_v5 = vsel %vm475_vm7, %v486_v2, -1e+09  ;;  %v426_v7 = vmul.f32 %v749_v62, %v389_v60  ;;  %v357_v12 = vadd.f32 %v355_v63, %v353_v59 }
 0x1aa   : > { %v751_v6 = vpop.eup %750  ;;  %v490_v8 = vmax.f32 %v1003_v32, %v488_v5  ;;  %v393_v13 = vmul.f32 4.0, %v745_v53  ;;  %v463_v17 = vmul.f32 1.442695, %v460_v1  ;;  %v489_v20 = vsel %vm475_vm7, %v487_v9, -1e+09 }
 0x1ab   : > { %760 = vpow2.f32 %v457_v3  ;;  %v390_v16 = vadd.f32 %v751_v6, %v388_v0  ;;  %v491_v21 = vmax.f32 %v452_v55, %v489_v20  ;;  %v392_v31 = vmul.f32 %v747_v57, %v357_v12 }
 0x1ac   : > { %v753_v11 = vpop.eup %752  ;;  %762 = vpow2.f32 %v461_v14  ;;  %v492_v18 = vsub.f32 %v1003_v32, %v490_v8  ;;  %v498_v19 = vsub.f32 %v488_v5, %v490_v8  ;;  %v395_v30 = vadd.f32 %v393_v13, %v391_v4 }
 0x1ad   : > { %v428_v23 = vadd.f32 %v753_v11, %v426_v7  ;;  %764 = vpow2.f32 %v463_v17  ;;  %v493_v27 = vsub.f32 %v452_v55, %v491_v21  ;;  %v499_v28 = vsub.f32 %v489_v20, %v491_v21 }
 0x1ae   : > { %v494_v24 = vmul.f32 1.442695, %v492_v18  ;;  %v500_v25 = vmul.f32 1.442695, %v498_v19  ;;  %v394_v33 = vmul.f32 4.0, %v751_v6  ;;  %v430_v39 = vmul.f32 %v749_v62, %v395_v30 }
 0x1af   : > { %v755_v22 = vpop.eup %754  ;;  %v496_v32 = vmul.f32 1.442695, %v493_v27  ;;  %v502_v35 = vmul.f32 1.442695, %v499_v28  ;;  %v432_v40 = vmul.f32 5.0, %v753_v11 }
 0x1b0   : > { %v427_v26 = vmul.f32 %v755_v22, %v390_v16  ;;  %v757_v29 = vpop.eup %756  ;;  %766 = vpow2.f32 %v494_v24  ;;  %v396_v38 = vadd.f32 %v394_v33, %v392_v31 }
 0x1b1   : > { %v759_v34 = vpop.eup %758  ;;  %768 = vpow2.f32 %v500_v25  ;;  %v465_v36 = vmul.f32 %v757_v29, %v428_v23  ;;  %v434_v44 = vadd.f32 %v432_v40, %v430_v39 }
 0x1b2   : > { %v429_v15 = vadd.f32 %v759_v34, %v427_v26  ;;  %770 = vpow2.f32 %v496_v32  ;;  %v431_v45 = vmul.f32 %v755_v22, %v396_v38  ;;  %v433_v46 = vmul.f32 5.0, %v759_v34 }
 0x1b3   : > { %772 = vpow2.f32 %v502_v35  ;;  %v469_v53 = vmul.f32 %v757_v29, %v434_v44 }
 0x1b4   : > { %v435_v52 = vadd.f32 %v433_v46, %v431_v45 }
 0x1b5   : > { %v761_v37 = vpop.eup %760 }
 0x1b6   : > { %v763_v41 = vpop.eup %762  ;;  %v466_v43 = vmul.f32 %v761_v37, %v429_v15  ;;  %v470_v60 = vmul.f32 %v761_v37, %v435_v52 }
 0x1b7   : > { %v467_v42 = vadd.f32 %v763_v41, %v465_v36  ;;  %v765_v47 = vpop.eup %764  ;;  %v471_v54 = vmul.f32 6.0, %v763_v41 }
 0x1b8   : > { %v468_v49 = vadd.f32 %v765_v47, %v466_v43  ;;  %v472_v10 = vmul.f32 6.0, %v765_v47 }
 0x1b9   : > { %v473_v59 = vadd.f32 %v471_v54, %v469_v53 }
 0x1ba   : > { %v767_v48 = vpop.eup %766  ;;  %v474_v62 = vadd.f32 %v472_v10, %v470_v60 }
 0x1bb   : > { %v504_v50 = vmul.f32 %v767_v48, %v467_v42  ;;  %v769_v51 = vpop.eup %768  ;;  %v508_v63 = vmul.f32 %v767_v48, %v473_v59 }
 0x1bc   : > { %v771_v56 = vpop.eup %770  ;;  %v510_v0 = vmul.f32 7.0, %v769_v51 }
 0x1bd   : > { %v506_v55 = vadd.f32 %v769_v51, %v504_v50  ;;  %v505_v57 = vmul.f32 %v771_v56, %v468_v49  ;;  %v773_v58 = vpop.eup %772  ;;  %v509_v1 = vmul.f32 %v771_v56, %v474_v62 }
 0x1be   : > { %v511_v2 = vmul.f32 7.0, %v773_v58  ;;  %v512_v14 = vadd.f32 %v510_v0, %v508_v63 }
 0x1bf   : > { %774 = vrcp.f32 %v506_v55  ;;  %v507_v61 = vadd.f32 %v773_v58, %v505_v57 }
 0x1c0   : > { %v513_v5 = vadd.f32 %v511_v2, %v509_v1 }
 0x1c1   : > { %776 = vrcp.f32 %v507_v61 }
 0x1c9   : > { %v775_v3 = vpop.eup %774 }
 0x1ca   : > { %v516_v4 = vmul.f32 %v775_v3, %v512_v14 }
 0x1cb   : > { %v777_v6 = vpop.eup %776 }
 0x1cc   : > { %519 = vst.msk [vmem:[%s187_s25] sm:$0xff] %vm518_vm8, %v516_v4  ;;  %v517_v7 = vmul.f32 %v777_v6, %v513_v5 }
 0x1ce   : > { %520 = vst.msk [vmem:[%s187_s25 + $0x8] sm:$0xff] %vm518_vm8, %v517_v7 }
 0x1cf   : > { %791 = shalt.err (!%p788_p5)
}
 0x1d0   : > { %s792_s6 = scalar_lea.hbm %s1023_s29, 256  ;;  %s796_s15 = scalar_lea.hbm %s1075_s2, 512 }
 0x1d1   : > { %p793_p6 = scmp.ne.s32.totalorder %s1023_s29, %s792_s6  ;;  %p797_p10 = scmp.lt.u32.totalorder %s1023_s29, %s1075_s2 }
 0x1d2   : > { %p798_p11 = scmp.lt.u32.totalorder %s796_s15, %s792_s6  ;;  %p800_p13 = scmp.lt.u32.totalorder %s792_s6, %s1023_s29 }
 0x1d3   : > { %p794_p7 = pnand %p793_p6, %p925_p4 }
 0x1d4   : > { %p799_p12 = por %p798_p11, %p797_p10 }
 0x1d5   : > { %p795_p9 = pneg %p794_p7 }
 0x1d6   : > { %p801_p0 = por %p800_p13, %p799_p12 }
 0x1d8   : > { %p802_p1 = pnand %p801_p0, %p795_p9 }
 0x1da   : > { %805 = shalt.err (!%p802_p1)
}
 0x1db   : > { %s868_s20 = smov 128   ;;  %s869_s23 = smov 8  }
 0x1dc   : > { %652 = dma.vmem_to_hbm [thread:$0]  (%p925_p4), %s1025_s26, 256, %s1023_s29, %s1027_s30, %s868_s20, %s868_s20, %s869_s23  }
 0x1dd PF: > { %p658_p2 = scmp.ge.s32.totalorder %s856_s14, 2  ;;  %s552_s24 = sand.u32 1, %s836_s9  }
 0x1de   : > { %s553_s25 = scalar_lea.sflag [#allocation3], %s552_s24 }
 0x1df   : > { %p655_p3 = pnand %p658_p2, %p932_p8 }
 0x1e1   : > { %831 = dma.done.wait (!%p655_p3), %s553_s25, 256  }
 0x1e2   : > { %833 = vsyncadd (!%p655_p3), %s553_s25, 4294967040  ;;  %s15_s14 = sadd.s32 1, %s856_s14   ;;  %s1078_s9 = smov %s840_s10 }
 0x1e3   : > { %p12_p5 = scmp.ge.s32.totalorder %s15_s14, 4   ;;  %s1079_s10 = smov %s844_s11 }
 0x1e4   : > { %s1080_s11 = smov %s938_s22  ;;  %s1081_s12 = smov %s852_s13 }
 0x1e5   : > { %s1082_s13 = smov %s1084_s17  ;;  %14 = sbr.rel (!%p12_p5) target bundleno = 4 (0x4), region = 66 }
 0x1ec   :  { %558 = vsyncpa [#allocation3], 1 }
 0x1ed   :  { %560 = vsyncpa [#allocation3 + $0x1], 1 }

// kernel: event_stereo_forward.2
= control target key start
LH: loop header
LB: loop body
LE: loop exit
PB: predicated region body
PF: predicated region fallthrough
CT: control target
= control target key end

     0   :  { %s991_s26 = smov 0   ;;  %s993_s27 = smov 0   ;;  %s1117_s0 = inlined_call_operand.vmem [shape: bf16[2,8,256], index: 0, kind: input, shape index: {}]   ;;  %s1118_s1 = inlined_call_operand.vmem [shape: bf16[2,8,256], index: 1, kind: input, shape index: {}]   ;;  %s1119_s2 = inlined_call_operand.vmem [shape: bf16[32,8], index: 2, kind: input, shape index: {}]   ;;  %s1120_s3 = inlined_call_operand.vmem [shape: f32[32,1], index: 3, kind: input, shape index: {}]   ;;  %s1121_s4 = inlined_call_operand.vmem [shape: bf16[1,32], index: 4, kind: input, shape index: {}]   ;;  %s1122_s5 = inlined_call_operand.<no memory space> [shape: f32[1,1], index: 5, kind: input, shape index: {}]   ;;  %s1123_s6 = inlined_call_operand.vmem [shape: f32[2,1,256], index: 6, kind: output, shape index: {0}]   ;;  %s1124_s7 = inlined_call_operand.vmem [shape: f32[2,1,256], index: 7, kind: output, shape index: {1}]  }
   0x1   :  { %v13_v0 = vstv %s1122_s5  ;;  %s995_s28 = smov 0  }
   0x2   :  { %14 = vst [vmem:[#allocation2] sm:$0x1] %v13_v0 }
   0x3 LB: > { %s32_s5 = sadd.s32 1, %s940_s27  ;;  %p863_p0 = scmp.ge.s32.totalorder %s944_s28, 1  ;;  %s944_s28 = sphi %s995_s28, %s20_s28   ;;  %s940_s27 = sphi %s993_s27, %s1128_s27   ;;  %s936_s26 = sphi %s991_s26, %s1127_s26  }
   0x4   : > { %p34_p1 = scmp.ge.s32.totalorder %s32_s5, 2  ;;  %p282_p2 = scmp.lt.s32.totalorder %s944_s28, 3 }
   0x6   : > { %s1130_s5 = smov (%p34_p1, %s32_s5), 0  ;;  %p283_p3 = pnand %p863_p0, %p282_p2 }
   0x7   : > { %p339_p4 = scmp.lt.s32.totalorder (!%p283_p3), %s936_s26, 1  ;;  %v946_v1 = vmov (!%p283_p3), 0   ;;  %v381_v2 = vld [vmem:[%s1120_s3] sm:$0xff] (!%p283_p3)  ;;  %v383_v3 = vld [vmem:[%s1120_s3 + $0x10] sm:$0xff] (!%p283_p3)  ;;  %v382_v4 = vld [vmem:[%s1120_s3 + $0x8] sm:$0xff] (!%p283_p3)  ;;  %vm430_vm0 = vcmask (!%p283_p3), 1043456   ;;  %v507_v50 = vlaneseq (!%p283_p3) }
   0x8   : > { %286 = sbr.rel (%p283_p3) target bundleno = 721 (0x2d1), region = 44  ;;  %469 = vmatprep.mubr.bf16.mxu0 (!%p283_p3), %v946_v1  ;;  %914 = vset.pattern.permute.xlu0 (!%p283_p3), %v946_v1  ;;  %v384_v5 = vld [vmem:[%s1120_s3 + $0x18] sm:$0xff] (!%p283_p3)  ;;  %v919_v11 = vld [vmem:[%s1119_s2] sm:$0xff] (!%p283_p3)   ;;  %vm423_vm1 = vcmask (!%p283_p3), 64512   ;;  %v920_v12 = vld [vmem:[%s1119_s2 + $0x8] sm:$0xff] (!%p283_p3)   ;;  %vm511_vm2 = vcmask (!%p283_p3), 261120  }
   0x9   : > { %915 = vset.pattern.permute.xlu1 (!%p283_p3), %v946_v1  ;;  %547 = vmatprep.mubr.bf16.mxu1 (!%p283_p3), %v946_v1  ;;  %v386_v9 = vld [vmem:[#allocation2] sm:$0x1] (!%p283_p3)  ;;  %v508_v51 = vshrl.u32 (!%p283_p3), %v507_v50, 7  ;;  %v947_v52 = vmov (!%p283_p3), 1966171168   ;;  %vm1085_vm3 = vcmp.lt.s32.totalorder (!%p283_p3), %v507_v50, 256 }
   0xa   : > { %390 = vperm.xlu0 (!%p283_p3), %914, %v381_v2   ;;  %400 = vperm.xlu1 (!%p283_p3), %915, %v383_v3   ;;  %v1069_v48 = vld [vmem:[%s1121_s4] sm:$0x1] (!%p283_p3)  ;;  %v560_v53 = vunpack.c.l.s4 (!%p283_p3), %v947_v52 }
   0xb   : > { %v509_v54 = vsub.s32 (!%p283_p3), 0, %v508_v51 }
   0xc   : > { %v561_v56 = vunpack.c.0.s8 (!%p283_p3), %v560_v53 }
   0xe   : > { %395 = vperm.xlu0 (!%p283_p3), %914, %v382_v4   ;;  %405 = vperm.xlu1 (!%p283_p3), %915, %v384_v5   ;;  %v564_v61 = vsub.s32 (!%p283_p3), %v561_v56, %v508_v51 }
   0xf   : > { %s1132_s26 = smov (!%p339_p4, %s936_s26), 1 }
  0x10   : > { %s886_s10 = sshll.u32 %s1132_s26, 3  ;;  %s868_s30 = sshll.u32 %s1132_s26, 1 }
  0x11   : > { %s346_s15 = scalar_lea.vmem %s1117_s0, %s886_s10  ;;  %s356_s24 = scalar_lea.vmem %s1118_s1, %s886_s10 }
  0x12   : > { %v387_v6 = vld [vmem:[%s346_s15] sm:$0xff]  ;;  %504 = vperm.xlu0 %914, %v386_v9   ;;  %s365_s10 = scalar_lea.vmem %s1123_s6, %s868_s30  ;;  %s374_s13 = scalar_lea.vmem %s1124_s7, %s868_s30 }
  0x13   : > { %v873_v7 = vcombine.high %v387_v6, %v387_v6  ;;  %v872_v8 = vcombine.low %v387_v6, %v387_v6  ;;  %v579_v39 = vld [vmem:[%s356_s24] sm:$0xff] }
  0x14   : > { %v879_v45 = vcombine.high %v579_v39, %v579_v39  ;;  %v878_v47 = vcombine.low %v579_v39, %v579_v39 }
  0x15   : > { %874 = vmatprep.subr.msk.bf16.mxu0 %vm430_vm0, %v873_v7  ;;  %v432_v10 = vsel %vm430_vm0, %v872_v8, 0 }
  0x16   : > { %438 = vmatpush1.bf16.msra.mxu0 %v432_v10  ;;  %v586_v49 = vsel %vm430_vm0, %v878_v47, 0 }
  0x19   : > { %875 = vmatmul.mubr.msk.bf16.vlgmr.msra.gmra.mrb[0].mxu0 %vm423_vm1, %v919_v11 }
  0x1a   : > { %479 = vmatprep.mubr.bf16.mxu0 %v946_v1 }
  0x21   : > { %876 = vmatmul.mubr.msk.bf16.gmra.mrb[4].mxu0 %vm423_vm1, %v920_v12 }
  0x22   : > { %688 = vmatprep.mubr.bf16.mxu0 %v946_v1 }
  0x89   : > { %v1045_v13 = vpop.permute.xlu0 %390  ;;  %v1052_v22 = vpop.permute.xlu1 %400 }
  0x8d   : > { %v1048_v17 = vpop.permute.xlu0 %395  ;;  %v1061_v33 = vpop.permute.xlu1 %405 }
  0x91   : > { %v505_v55 = vpop.permute.xlu0 %504 }
  0x92   : > { %v510_v57 = vrot.slane %v505_v55, %v509_v54 }
  0xec   : > { %v471_v14 = vpop.f32.mrb[0].mxu0 }
  0xed   : > { %v472_v15 = vadd.f32 %v471_v14, %v1045_v13  ;;  %v473_v16 = vpop.f32.mrb[1].mxu0 }
  0xee   : > { %v474_v18 = vadd.f32 %v473_v16, %v1045_v13  ;;  %v475_v19 = vpop.f32.mrb[2].mxu0 }
  0xef   : > { %v476_v20 = vadd.f32 %v475_v19, %v1048_v17  ;;  %v477_v21 = vpop.f32.mrb[3].mxu0  ;;  %v490_v24 = vmax.f32 %v472_v15, 0.0 }
  0xf0   : > { %v478_v23 = vadd.f32 %v477_v21, %v1048_v17  ;;  %v491_v26 = vmax.f32 %v474_v18, 0.0 }
  0xf1   : > { %v492_v25 = vmax.f32 %v476_v20, 0.0 }
  0xf2   : > { %v493_v27 = vmax.f32 %v478_v23, 0.0 }
  0xf3   : > { %v498_v28 = vpack.c.bf16 %v492_v25, %v490_v24 }
  0xf4   : > { %v481_v29 = vpop.f32.mrb[4].mxu0  ;;  %v499_v30 = vpack.c.bf16 %v493_v27, %v491_v26 }
  0xf5   : > { %v482_v31 = vadd.f32 %v481_v29, %v1052_v22  ;;  %v483_v32 = vpop.f32.mrb[5].mxu0 }
  0xf6   : > { %v484_v34 = vadd.f32 %v483_v32, %v1052_v22  ;;  %v485_v35 = vpop.f32.mrb[6].mxu0  ;;  %515 = vmatprep.subr.bf16.mxu1 %v499_v30 }
  0xf7   : > { %v486_v36 = vadd.f32 %v485_v35, %v1061_v33  ;;  %v487_v37 = vpop.f32.mrb[7].mxu0  ;;  %516 = vmatpush1.bf16.msra.mxu1 %v498_v28  ;;  %v494_v40 = vmax.f32 %v482_v31, 0.0 }
  0xf8   : > { %v488_v38 = vadd.f32 %v487_v37, %v1061_v33  ;;  %v495_v42 = vmax.f32 %v484_v34, 0.0 }
  0xf9   : > { %v496_v41 = vmax.f32 %v486_v36, 0.0 }
  0xfa   : > { %v497_v43 = vmax.f32 %v488_v38, 0.0 }
  0xfb   : > { %v500_v44 = vpack.c.bf16 %v496_v41, %v494_v40 }
  0xfc   : > { %v501_v46 = vpack.c.bf16 %v497_v43, %v495_v42 }
  0xfe   : > { %517 = vmatprep.subr.bf16.mxu1 %v501_v46 }
  0xff   : > { %518 = vmatpush1.bf16.msra.mxu1 %v500_v44 }
 0x100   : > { %880 = vmatprep.subr.msk.bf16.mxu1 %vm430_vm0, %v879_v45 }
 0x102   : > { %877 = vmatmul.mubr.msk.bf16.vlgmr.msra.gmra.mrb[0].mxu1 %vm511_vm2, %v1069_v48 }
 0x103   : > { %592 = vmatpush1.bf16.msra.mxu1 %v586_v49  ;;  %623 = vmatprep.mubr.bf16.mxu1 %v946_v1 }
 0x10a   : > { %881 = vmatmul.mubr.msk.bf16.vlgmr.msra.gmra.mrb[4].mxu1 %vm423_vm1, %v919_v11 }
 0x10b   : > { %633 = vmatprep.mubr.bf16.mxu1 %v946_v1 }
 0x112   : > { %882 = vmatmul.mubr.msk.bf16.gmra.mrb[8].mxu1 %vm423_vm1, %v920_v12 }
 0x1d5   : > { %v549_v58 = vpop.f32.mrb[0].mxu1 }
 0x1d6   : > { %v550_v59 = vadd.f32 %v549_v58, %v510_v57  ;;  %v551_v60 = vpop.f32.mrb[1].mxu1 }
 0x1d7   : > { %v552_v62 = vadd.f32 %v551_v60, %v510_v57  ;;  %v553_v63 = vpop.f32.mrb[2].mxu1 }
 0x1d8   : > { %v554_v0 = vpop.f32.mrb[3].mxu1 }
 0x1d9   : > { %v558_v1 = vcombine.low %v550_v59, %v552_v62 }
 0x1db   : > { %v565_v2 = vrot.slane %v558_v1, %v564_v61 }
 0x1dd   : > { %v572_v4 = vrot.slane %v565_v2, %v564_v61  ;;  %v625_v5 = vpop.f32.mrb[4].mxu1 }
 0x1de   : > { %v626_v6 = vadd.f32 %v625_v5, %v1045_v13  ;;  %v627_v7 = vpop.f32.mrb[5].mxu1 }
 0x1df   : > { %578 = vst.msk [vmem:[%s365_s10] sm:$0x3] %vm1085_vm3, %v572_v4  ;;  %v628_v8 = vadd.f32 %v627_v7, %v1045_v13  ;;  %v629_v9 = vpop.f32.mrb[6].mxu1 }
 0x1e0   : > { %v630_v10 = vadd.f32 %v629_v9, %v1048_v17  ;;  %v631_v11 = vpop.f32.mrb[7].mxu1  ;;  %v644_v14 = vmax.f32 %v626_v6, 0.0 }
 0x1e1   : > { %v632_v12 = vadd.f32 %v631_v11, %v1048_v17  ;;  %v645_v16 = vmax.f32 %v628_v8, 0.0 }
 0x1e2   : > { %v646_v15 = vmax.f32 %v630_v10, 0.0 }
 0x1e3   : > { %v647_v18 = vmax.f32 %v632_v12, 0.0 }
 0x1e4   : > { %v652_v19 = vpack.c.bf16 %v646_v15, %v644_v14 }
 0x1e5   : > { %v653_v20 = vpack.c.bf16 %v647_v18, %v645_v16  ;;  %v635_v21 = vpop.f32.mrb[8].mxu1 }
 0x1e6   : > { %v636_v23 = vadd.f32 %v635_v21, %v1052_v22  ;;  %v637_v24 = vpop.f32.mrb[9].mxu1 }
 0x1e7   : > { %v638_v25 = vadd.f32 %v637_v24, %v1052_v22  ;;  %v639_v26 = vpop.f32.mrb[10].mxu1  ;;  %656 = vmatprep.subr.bf16.mxu0 %v653_v20 }
 0x1e8   : > { %v640_v13 = vadd.f32 %v639_v26, %v1061_v33  ;;  %v641_v27 = vpop.f32.mrb[11].mxu1  ;;  %657 = vmatpush1.bf16.msra.mxu0 %v652_v19  ;;  %v648_v28 = vmax.f32 %v636_v23, 0.0 }
 0x1e9   : > { %v642_v17 = vadd.f32 %v641_v27, %v1061_v33  ;;  %v649_v30 = vmax.f32 %v638_v25, 0.0 }
 0x1ea   : > { %v650_v29 = vmax.f32 %v640_v13, 0.0 }
 0x1eb   : > { %v651_v31 = vmax.f32 %v642_v17, 0.0 }
 0x1ec   : > { %v654_v32 = vpack.c.bf16 %v650_v29, %v648_v28 }
 0x1ed   : > { %v655_v34 = vpack.c.bf16 %v651_v31, %v649_v30 }
 0x1ef   : > { %658 = vmatprep.subr.bf16.mxu0 %v655_v34 }
 0x1f0   : > { %659 = vmatpush1.bf16.msra.mxu0 %v654_v32 }
 0x1f3   : > { %883 = vmatmul.mubr.msk.bf16.vlgmr.msra.gmra.mrb[8].mxu0 %vm511_vm2, %v1069_v48 }
 0x2c6   : > { %v690_v22 = vpop.f32.mrb[8].mxu0 }
 0x2c7   : > { %v691_v35 = vadd.f32 %v690_v22, %v510_v57  ;;  %v692_v36 = vpop.f32.mrb[9].mxu0 }
 0x2c8   : > { %v693_v37 = vadd.f32 %v692_v36, %v510_v57  ;;  %v694_v38 = vpop.f32.mrb[10].mxu0 }
 0x2c9   : > { %v695_v39 = vpop.f32.mrb[11].mxu0 }
 0x2ca   : > { %v699_v40 = vcombine.low %v691_v35, %v693_v37 }
 0x2cc   : > { %v706_v33 = vrot.slane %v699_v40, %v564_v61 }
 0x2ce   : > { %v713_v41 = vrot.slane %v706_v33, %v564_v61 }
 0x2d0   : > { %715 = vst.msk [vmem:[%s374_s13] sm:$0x3] %vm1085_vm3, %v713_v41 }
 0x2d1 PF: > { %s20_s28 = sadd.s32 1, %s944_s28   ;;  %s1127_s26 = smov %s940_s27 }
 0x2d2   : > { %p17_p5 = scmp.ge.s32.totalorder %s20_s28, 4   ;;  %s1128_s27 = smov %s1130_s5 }
 0x2d4   :  { %19 = sbr.rel (!%p17_p5) target bundleno = 3 (0x3), region = 89 }

</bundles_post_ra>
